<compile_context>
chip_gen: v5e
topology: v5e:2x2
jax: 0.10.0
libtpu: 0.0.40
codegen_flags: <defaults>
</compile_context>

<pallas_src>
import jax
import jax.numpy as jnp
import numpy as np
from jax.experimental import pallas as pl
from jax.experimental.pallas import tpu as pltpu

# ---------------- module config (mirrors AdaptiveEmbedding.__init__) -----------------
N_TOKENS = 48
D_EMBED = 64
D_PROJ = 32
CUTOFFS = [16, 32]
DIV_VAL = 2
CUTOFF_ENDS = [0] + CUTOFFS + [N_TOKENS]                         # [0, 16, 32, 48]
N_CLUSTERS = len(CUTOFF_ENDS) - 1                                # 3
D_EMBS = [D_EMBED // DIV_VAL ** i for i in range(N_CLUSTERS)]    # [64, 32, 16]
EMB_SCALE = float(D_PROJ) ** 0.5


def _round_up(x, m):
    return (x + m - 1) // m * m


PACK = 4                               # tokens packed per lane-dense output row
V_PAD = _round_up(N_TOKENS, 128)       # 128: one-hot width per token
K_DIM = PACK * V_PAD                   # 512: matmul contraction dim (block-diag table)
D_OUT = PACK * D_PROJ                  # 128: lane-dense output row (4 x 32 lanes)
MIN_TILE_TOKENS = 256                  # 64 output rows (sublane-aligned, multiple of 8)


# ---------------- Pallas kernel -------------------------------------------------------
def adaptive_embedding_kernel(idx_ref, fused_ref, out_ref):
    """idx_ref: (R, PACK) int32, fused_ref: (K_DIM, D_OUT), out_ref: (R, D_OUT) f32.

    Builds a (R, K_DIM) "4-hot" selector (one 128-wide one-hot per packed token, each
    offset into its own V_PAD-sized K block) and does a single MXU matmul against the
    block-diagonally stacked fused table.  Token j of row r lands in lanes
    [32j, 32j+32) of output row r.  Invalid / padded indices give all-zero rows.
    """
    idx = idx_ref[...]                                              # (R, PACK) int32
    rows = idx.shape[0]
    iota = jax.lax.broadcasted_iota(jnp.int32, (rows, V_PAD), 1)    # (R, 128)
    dt = fused_ref.dtype
    onehot = jnp.concatenate(
        [(iota == idx[:, j:j + 1]).astype(dt) for j in range(PACK)],
        axis=1)                                                     # (R, K_DIM)
    out_ref[...] = jnp.dot(onehot, fused_ref[...],
                           preferred_element_type=jnp.float32)      # (R, D_OUT)


# ---------------- fused table (hoistable: precompute once for inference) --------------
def build_fused_table(emb_tables, proj_weights, table_dtype=jnp.bfloat16):
    """Returns the (K_DIM, D_OUT) block-diagonally stacked fused table.

    Copy j (K rows [j*V_PAD, (j+1)*V_PAD), lanes [j*D_PROJ, (j+1)*D_PROJ)) holds
    concat_i(emb_i @ W_i^T) * sqrt(d_proj), zero-padded to V_PAD rows.
    """
    fused = jnp.concatenate(
        [emb_tables[i] @ proj_weights[i].T for i in range(N_CLUSTERS)], axis=0)
    fused = fused * EMB_SCALE                                       # (N_TOKENS, D_PROJ)
    fused = jnp.pad(fused, ((0, V_PAD - N_TOKENS), (0, 0)))         # (V_PAD, D_PROJ)
    blocks = [jnp.pad(fused, ((0, 0), (j * D_PROJ, D_OUT - (j + 1) * D_PROJ)))
              for j in range(PACK)]                                  # each (V_PAD, D_OUT)
    big = jnp.concatenate(blocks, axis=0)                            # (K_DIM, D_OUT)
    return big.astype(table_dtype)


# ---------------- wrapper --------------------------------------------------------------
def adaptive_embedding(indices, emb_tables=None, proj_weights=None, *,
                       fused_table=None, tile_n=2048, table_dtype=jnp.bfloat16):
    """indices: int array of any shape; returns (*indices.shape, D_PROJ) float32.

    Pass a precomputed `fused_table` (from build_fused_table) to avoid re-tracing the
    per-cluster projections every call.  table_dtype=jnp.float32 for bit-tight accuracy;
    the bf16 default halves table DMA/VMEM and uses the native bf16 MXU path.
    """
    assert tile_n % MIN_TILE_TOKENS == 0
    orig_shape = indices.shape
    idx_flat = indices.reshape(-1).astype(jnp.int32)                 # (N,)
    n = int(idx_flat.shape[0])

    if fused_table is None:
        fused_table = build_fused_table(emb_tables, proj_weights, table_dtype)
    table_itemsize = jnp.dtype(fused_table.dtype).itemsize

    # --- tile sizing: big tiles at big N, but keep >= 2 grid steps when there is enough
    # work so v7x's two TensorCores both run ("parallel" axis).
    n_eff = max(n, 1)
    half = _round_up((n_eff + 1) // 2, MIN_TILE_TOKENS)
    tile_tokens = max(MIN_TILE_TOKENS, min(tile_n, half))
    n_pad = _round_up(n_eff, tile_tokens)
    rows_pad = n_pad // PACK
    tile_rows = tile_tokens // PACK                                  # multiple of 64

    # Pad with -1 -> all-zero one-hot rows; packed PACK tokens per index row.
    idx_pad = jnp.pad(idx_flat, (0, n_pad - n),
                      constant_values=-1).reshape(rows_pad, PACK)

    cost = pl.CostEstimate(
        flops=2 * rows_pad * K_DIM * D_OUT,
        transcendentals=0,
        bytes_accessed=(rows_pad * PACK * 4                          # indices
                        + K_DIM * D_OUT * table_itemsize             # fused table
                        + rows_pad * D_OUT * 4),                     # output
    )

    out = pl.pallas_call(
        adaptive_embedding_kernel,
        out_shape=jax.ShapeDtypeStruct((rows_pad, D_OUT), jnp.float32),
        grid=(rows_pad // tile_rows,),
        in_specs=[
            pl.BlockSpec((tile_rows, PACK), lambda i: (i, 0)),       # packed idx tile
            pl.BlockSpec((K_DIM, D_OUT), lambda i: (0, 0)),          # resident fused table
        ],
        out_specs=pl.BlockSpec((tile_rows, D_OUT), lambda i: (i, 0)),
        compiler_params=pltpu.CompilerParams(
            dimension_semantics=("parallel",),
            vmem_limit_bytes=32 * 1024 * 1024),
        cost_estimate=cost,
    )(idx_pad, fused_table)

    # (rows_pad, 128) -> (n_pad, 32) is a contiguous (row-major) reshape: row r lanes
    # [32j, 32j+32) are token 4r+j.  Then drop the padded rows.
    out = out.reshape(n_pad, D_PROJ)[:n]
    return out.reshape(*orig_shape, D_PROJ)


# ---------------- pure-JAX reference (for correctness check) ---------------------------
def adaptive_embedding_ref(indices, emb_tables, proj_weights):
    idx_flat = indices.reshape(-1).astype(jnp.int32)
    n = idx_flat.shape[0]
    out = jnp.zeros((n, D_PROJ), jnp.float32)
    for i in range(N_CLUSTERS):
        l_idx, r_idx = CUTOFF_ENDS[i], CUTOFF_ENDS[i + 1]
        mask = (idx_flat >= l_idx) & (idx_flat < r_idx)
        local = jnp.clip(idx_flat - l_idx, 0, r_idx - l_idx - 1)
        emb_i = jnp.take(emb_tables[i], local, axis=0)               # (N, d_emb_i)
        proj_i = emb_i @ proj_weights[i].T                           # (N, d_proj)
        out = out + jnp.where(mask[:, None], proj_i, 0.0)
    out = out * EMB_SCALE
    return out.reshape(*indices.shape, D_PROJ)


# ---------------- main ------------------------------------------------------------------
if __name__ == "__main__":
    key = jax.random.PRNGKey(0)
    k_idx, k_idx2, *k_params = jax.random.split(key, 2 + 2 * N_CLUSTERS)

    # Deterministic synthetic parameters (shapes per AdaptiveEmbedding.__init__).
    emb_tables, proj_weights = [], []
    for i in range(N_CLUSTERS):
        l_idx, r_idx = CUTOFF_ENDS[i], CUTOFF_ENDS[i + 1]
        vocab_i, d_emb_i = r_idx - l_idx, D_EMBS[i]
        emb_tables.append(
            jax.random.normal(k_params[2 * i], (vocab_i, d_emb_i), jnp.float32) * 0.02)
        proj_weights.append(
            jax.random.normal(k_params[2 * i + 1], (D_PROJ, d_emb_i), jnp.float32) * 0.02)

    # --- small example (batch=2, seq=8), f32 table path: bit-tight tolerance.
    indices = jax.random.randint(k_idx, (2, 8), 0, N_TOKENS, dtype=jnp.int32)
    out = jax.block_until_ready(
        adaptive_embedding(indices, emb_tables, proj_weights, table_dtype=jnp.float32))
    ref = adaptive_embedding_ref(indices, emb_tables, proj_weights)
    np.testing.assert_allclose(np.asarray(out), np.asarray(ref), rtol=1e-5, atol=1e-6)
    assert out.shape == (2, 8, D_PROJ)

    # --- larger example (batch=4, seq=200) exercising the multi-step "parallel" grid,
    # bf16 default table, with the fused table hoisted/precomputed once (inference path).
    fused_bf16 = build_fused_table(emb_tables, proj_weights, jnp.bfloat16)
    indices2 = jax.random.randint(k_idx2, (4, 200), 0, N_TOKENS, dtype=jnp.int32)
    out2 = jax.block_until_ready(
        adaptive_embedding(indices2, fused_table=fused_bf16))
    ref2 = adaptive_embedding_ref(indices2, emb_tables, proj_weights)
    # bf16 rounds the fused table values (selection stays exact) -> looser tolerance.
    np.testing.assert_allclose(np.asarray(out2), np.asarray(ref2), rtol=2e-2, atol=2e-2)
    assert out2.shape == (4, 200, D_PROJ)

    print("KERNEL_OK")
</pallas_src>

<mosaic_0001>
module attributes {stable_mosaic.version = 11 : i64} {
  func.func @adaptive_embedding_kernel(%arg0: i32, %arg1: memref<64x4xi32, #tpu.memory_space<vmem>>, %arg2: memref<512x128xf32, #tpu.memory_space<vmem>>, %arg3: memref<64x128xf32, #tpu.memory_space<vmem>>) attributes {dimension_semantics = [#tpu.dimension_semantics<parallel>], iteration_bounds = array<i64: 1>, scalar_prefetch = 0 : i64, scratch_operands = 0 : i64, tpu.core_type = #tpu.core_type<tc>, window_params = [{transform_indices = @transform_0, window_bounds = array<i64: 64, 4>}, {pipeline_mode = #tpu.pipeline_mode<synchronous>, transform_indices = @transform_1, window_bounds = array<i64: 512, 128>}, {transform_indices = @transform_2, window_bounds = array<i64: 64, 128>}]} {
    %c0 = arith.constant 0 : index
    %c0_0 = arith.constant 0 : index
    %0 = vector.load %arg1[%c0, %c0_0] : memref<64x4xi32, #tpu.memory_space<vmem>>, vector<64x4xi32>
    %1 = tpu.iota {dimensions = array<i32: 1>} : vector<64x128xi32>
    %2 = vector.extract_strided_slice %0 {offsets = [0, 0], sizes = [64, 1], strides = [1, 1]} : vector<64x4xi32> to vector<64x1xi32>
    %3 = vector.broadcast %2 : vector<64x1xi32> to vector<64x128xi32>
    %4 = arith.cmpi eq, %1, %3 : vector<64x128xi32>
    %5 = arith.extui %4 : vector<64x128xi1> to vector<64x128xi32>
    %6 = arith.sitofp %5 : vector<64x128xi32> to vector<64x128xf32>
    %7 = vector.extract_strided_slice %0 {offsets = [0, 1], sizes = [64, 1], strides = [1, 1]} : vector<64x4xi32> to vector<64x1xi32>
    %8 = vector.broadcast %7 : vector<64x1xi32> to vector<64x128xi32>
    %9 = arith.cmpi eq, %1, %8 : vector<64x128xi32>
    %10 = arith.extui %9 : vector<64x128xi1> to vector<64x128xi32>
    %11 = arith.sitofp %10 : vector<64x128xi32> to vector<64x128xf32>
    %12 = vector.extract_strided_slice %0 {offsets = [0, 2], sizes = [64, 1], strides = [1, 1]} : vector<64x4xi32> to vector<64x1xi32>
    %13 = vector.broadcast %12 : vector<64x1xi32> to vector<64x128xi32>
    %14 = arith.cmpi eq, %1, %13 : vector<64x128xi32>
    %15 = arith.extui %14 : vector<64x128xi1> to vector<64x128xi32>
    %16 = arith.sitofp %15 : vector<64x128xi32> to vector<64x128xf32>
    %17 = vector.extract_strided_slice %0 {offsets = [0, 3], sizes = [64, 1], strides = [1, 1]} : vector<64x4xi32> to vector<64x1xi32>
    %18 = vector.broadcast %17 : vector<64x1xi32> to vector<64x128xi32>
    %19 = arith.cmpi eq, %1, %18 : vector<64x128xi32>
    %20 = arith.extui %19 : vector<64x128xi1> to vector<64x128xi32>
    %21 = arith.sitofp %20 : vector<64x128xi32> to vector<64x128xf32>
    %22 = tpu.concatenate %6, %11, %16, %21 in 1 : vector<64x128xf32>, vector<64x128xf32>, vector<64x128xf32>, vector<64x128xf32> -> vector<64x512xf32>
    %c0_1 = arith.constant 0 : index
    %c0_2 = arith.constant 0 : index
    %23 = vector.load %arg2[%c0_1, %c0_2] : memref<512x128xf32, #tpu.memory_space<vmem>>, vector<512x128xf32>
    %cst = arith.constant dense<0.000000e+00> : vector<64x128xf32>
    %24 = tpu.matmul %22, %23, %cst {dimension_numbers = #tpu.dot_dimension_numbers<[1], [0], [0], [1], [0, 0, 1, 1], [], []>} : vector<64x512xf32>, vector<512x128xf32>, vector<64x128xf32> -> vector<64x128xf32>
    %c0_3 = arith.constant 0 : index
    %c0_4 = arith.constant 0 : index
    %25 = vector.load %arg3[%c0_3, %c0_4] : memref<64x128xf32, #tpu.memory_space<vmem>>, vector<64x128xf32>
    tpu.vector_store %arg3[%c0_3, %c0_4], %24 {strides = array<i32>} : memref<64x128xf32, #tpu.memory_space<vmem>>, vector<64x128xf32>,
    return
  }
  func.func @transform_0(%arg0: i32) -> (i32, i32) {
    %c0_i32 = arith.constant 0 : i32
    %c0_i32_0 = arith.constant 0 : i32
    return %arg0, %c0_i32 : i32, i32
  }
  func.func @transform_1(%arg0: i32) -> (i32, i32) {
    %c0_i32 = arith.constant 0 : i32
    %c0_i32_0 = arith.constant 0 : i32
    %c0_i32_1 = arith.constant 0 : i32
    return %c0_i32, %c0_i32_0 : i32, i32
  }
  func.func @transform_2(%arg0: i32) -> (i32, i32) {
    %c0_i32 = arith.constant 0 : i32
    %c0_i32_0 = arith.constant 0 : i32
    return %arg0, %c0_i32 : i32, i32
  }
}

</mosaic_0001>

<bundles_post_ra>
// kernel: tpu_custom_call.1
= control target key start
LH: loop header
LB: loop body
LE: loop exit
PB: predicated region body
PF: predicated region fallthrough
CT: control target
= control target key end

     0   :  { %7 = vsyncpa [#allocation3], 0  ;;  %s810_s0 = inlined_call_operand.vmem [shape: s32[64,4], index: 0, kind: input, shape index: {}]   ;;  %s811_s1 = inlined_call_operand.hbm [shape: f32[512,128], index: 1, kind: input, shape index: {}]   ;;  %s812_s2 = inlined_call_operand.hbm [shape: f32[64,128], index: 2, kind: output, shape index: {}]  }
   0x1   :  { %8 = vsyncpa [#allocation4], 0  ;;  %s15_s11 = sshll.u32 %s811_s1, 4  ;;  %s641_s12 = smov [#allocation2]   ;;  %s16_s11 = int_to_ptr.hbm [resolvable:$true] %s15_s11 }
   0x2   :  { %s17_s13 = sshll.u32 %s641_s12, 4  ;;  %s642_s14 = smov 128   ;;  %s18_s13 = int_to_ptr.vmem [resolvable:$true] %s17_s13 }
   0x3   :  { %s643_s15 = smov 8  }
   0x4   :  { %23 = dma.hbm_to_vmem [thread:$0]  %s16_s11, 8192, %s18_s13, [#allocation3], %s642_s14, %s642_s14, %s643_s15  }
   0x5   :  { %637 = dma.done.wait [#allocation3], 8192  }
   0x6   :  { %638 = vsyncadd [#allocation3], 4294959104  ;;  %v644_v0 = vmov 2   ;;  %v645_v1 = vmov 0   ;;  %v28_v2 = vld [vmem:[%s810_s0] sm:$0xff]  ;;  %v29_v3 = vld [vmem:[%s810_s0 + $0x8] sm:$0xff] }
   0x7   :  { %558 = vset.pattern.permute.xlu0 %v644_v0  ;;  %559 = vset.pattern.permute.xlu1 %v645_v1  ;;  %v30_v4 = vld [vmem:[%s810_s0 + $0x10] sm:$0xff]  ;;  %v646_v5 = vmov 1   ;;  %v647_v6 = vmov 3   ;;  %v31_v7 = vld [vmem:[%s810_s0 + $0x18] sm:$0xff]  ;;  %v32_v8 = vld [vmem:[%s810_s0 + $0x20] sm:$0xff]  ;;  %s472_s6 = sshll.u32 %s812_s2, 4  ;;  %s473_s6 = int_to_ptr.hbm [resolvable:$true] %s472_s6 }
   0x8   :  { %561 = vset.pattern.permute.xlu2 %v644_v0  ;;  %39 = vperm.xlu1 %559, %v28_v2   ;;  %v702_v9 = vld [vmem:[%s810_s0 + $0x28] sm:$0xff]  ;;  %v245_v10 = vld [vmem:[#allocation2 + $0x78] sm:$0xff]  ;;  %v244_v12 = vld [vmem:[#allocation2 + $0x70] sm:$0xff] }
   0x9   :  { %135 = vperm.xlu0 %558, %v28_v2   ;;  %138 = vperm.xlu2 %561, %v29_v3   ;;  %v277_v11 = vld [vmem:[#allocation2 + $0x178] sm:$0xff]  ;;  %v276_v13 = vld [vmem:[#allocation2 + $0x170] sm:$0xff]  ;;  %v243_v14 = vld [vmem:[#allocation2 + $0x68] sm:$0xff] }
   0xa   :  { %294 = vmatpush.msra.mxu0 %v245_v10  ;;  %376 = vmatpush.msra.mxu2 %v277_v11  ;;  %v275_v15 = vld [vmem:[#allocation2 + $0x168] sm:$0xff]  ;;  %v242_v16 = vld [vmem:[#allocation2 + $0x60] sm:$0xff]  ;;  %v241_v18 = vld [vmem:[#allocation2 + $0x58] sm:$0xff] }
   0xb   :  { %v274_v17 = vld [vmem:[#allocation2 + $0x160] sm:$0xff]  ;;  %v261_v19 = vld [vmem:[#allocation2 + $0xf8] sm:$0xff]  ;;  %v240_v21 = vld [vmem:[#allocation2 + $0x50] sm:$0xff] }
   0xc   :  { %295 = vmatpush.msra.mxu0 %v244_v12  ;;  %377 = vmatpush.msra.mxu2 %v276_v13  ;;  %v273_v20 = vld [vmem:[#allocation2 + $0x158] sm:$0xff]  ;;  %v260_v22 = vld [vmem:[#allocation2 + $0xf0] sm:$0xff]  ;;  %v239_v24 = vld [vmem:[#allocation2 + $0x48] sm:$0xff] }
   0xd   :  { %335 = vmatpush.msra.mxu1 %v261_v19  ;;  %v272_v23 = vld [vmem:[#allocation2 + $0x150] sm:$0xff]  ;;  %v259_v25 = vld [vmem:[#allocation2 + $0xe8] sm:$0xff]  ;;  %v238_v27 = vld [vmem:[#allocation2 + $0x40] sm:$0xff] }
   0xe   :  { %296 = vmatpush.msra.mxu0 %v243_v14  ;;  %378 = vmatpush.msra.mxu2 %v275_v15  ;;  %v271_v26 = vld [vmem:[#allocation2 + $0x148] sm:$0xff]  ;;  %v717_v28 = vld [vmem:[%s810_s0 + $0x38] sm:$0xff]  ;;  %v258_v29 = vld [vmem:[#allocation2 + $0xe0] sm:$0xff] }
   0xf   :  { %336 = vmatpush.msra.mxu1 %v260_v22  ;;  %v270_v30 = vld [vmem:[#allocation2 + $0x140] sm:$0xff]  ;;  %v237_v31 = vld [vmem:[#allocation2 + $0x38] sm:$0xff]  ;;  %v236_v35 = vld [vmem:[#allocation2 + $0x30] sm:$0xff] }
  0x10   :  { %560 = vset.pattern.permute.xlu1 %v646_v5  ;;  %297 = vmatpush.msra.mxu0 %v242_v16  ;;  %v257_v32 = vld [vmem:[#allocation2 + $0xd8] sm:$0xff]  ;;  %v256_v36 = vld [vmem:[#allocation2 + $0xd0] sm:$0xff]  ;;  %v235_v39 = vld [vmem:[#allocation2 + $0x28] sm:$0xff] }
  0x11   :  { %141 = vperm.xlu0 %558, %v30_v4   ;;  %87 = vperm.xlu1 %560, %v28_v2   ;;  %v293_v33 = vld [vmem:[#allocation2 + $0x1f8] sm:$0xff]  ;;  %v268_v37 = vld [vmem:[#allocation2 + $0x130] sm:$0xff]  ;;  %v255_v40 = vld [vmem:[#allocation2 + $0xc8] sm:$0xff] }
  0x12   :  { %562 = vset.pattern.permute.xlu2 %v647_v6  ;;  %379 = vmatpush.msra.mxu2 %v274_v17  ;;  %v269_v34 = vld [vmem:[#allocation2 + $0x138] sm:$0xff]  ;;  %v292_v38 = vld [vmem:[#allocation2 + $0x1f0] sm:$0xff]  ;;  %v267_v41 = vld [vmem:[#allocation2 + $0x128] sm:$0xff]  ;;  %v36_v17 = vlaneseq }
  0x13   :  { %186 = vperm.xlu2 %562, %v29_v3   ;;  %298 = vmatpush.msra.mxu0 %v241_v18  ;;  %v291_v42 = vld [vmem:[#allocation2 + $0x1e8] sm:$0xff]  ;;  %v234_v43 = vld [vmem:[#allocation2 + $0x20] sm:$0xff]  ;;  %v233_v47 = vld [vmem:[#allocation2 + $0x18] sm:$0xff] }
  0x14   :  { %380 = vmatpush.msra.mxu2 %v273_v20  ;;  %337 = vmatpush.msra.mxu1 %v259_v25  ;;  %v254_v44 = vld [vmem:[#allocation2 + $0xc0] sm:$0xff]  ;;  %v34_v48 = vld [vmem:[%s810_s0 + $0x30] sm:$0xff]  ;;  %v253_v49 = vld [vmem:[#allocation2 + $0xb8] sm:$0xff]  ;;  %s649_s0 = smov [#allocation5]  }
  0x15   :  { %299 = vmatpush.msra.mxu0 %v240_v21  ;;  %417 = vmatpush.msra.mxu3 %v293_v33  ;;  %v266_v45 = vld [vmem:[#allocation2 + $0x120] sm:$0xff]  ;;  %v265_v50 = vld [vmem:[#allocation2 + $0x118] sm:$0xff]  ;;  %v232_v52 = vld [vmem:[#allocation2 + $0x10] sm:$0xff]  ;;  %s470_s3 = sshll.u32 %s649_s0, 4  ;;  %s471_s3 = int_to_ptr.vmem [resolvable:$true] %s470_s3 }
  0x16   :  { %381 = vmatpush.msra.mxu2 %v272_v23  ;;  %338 = vmatpush.msra.mxu1 %v258_v29  ;;  %v290_v46 = vld [vmem:[#allocation2 + $0x1e0] sm:$0xff]  ;;  %v289_v51 = vld [vmem:[#allocation2 + $0x1d8] sm:$0xff]  ;;  %v252_v53 = vld [vmem:[#allocation2 + $0xb0] sm:$0xff] }
  0x17   :  { %300 = vmatpush.msra.mxu0 %v239_v24  ;;  %418 = vmatpush.msra.mxu3 %v292_v38  ;;  %v264_v54 = vld [vmem:[#allocation2 + $0x110] sm:$0xff]  ;;  %v231_v56 = vld [vmem:[#allocation2 + $0x8] sm:$0xff]  ;;  %v230_v60 = vld [vmem:[#allocation2] sm:$0xff] }
  0x18   :  { %382 = vmatpush.msra.mxu2 %v271_v26  ;;  %339 = vmatpush.msra.mxu1 %v257_v32  ;;  %v288_v55 = vld [vmem:[#allocation2 + $0x1d0] sm:$0xff]  ;;  %v251_v57 = vld [vmem:[#allocation2 + $0xa8] sm:$0xff]  ;;  %v250_v61 = vld [vmem:[#allocation2 + $0xa0] sm:$0xff] }
  0x19   :  { %565 = vset.pattern.permute.xlu0 %v647_v6  ;;  %563 = vset.pattern.permute.xlu1 %v645_v1  ;;  %v263_v58 = vld [vmem:[#allocation2 + $0x108] sm:$0xff]  ;;  %v262_v62 = vld [vmem:[#allocation2 + $0x100] sm:$0xff]  ;;  %v281_v12 = vld [vmem:[#allocation2 + $0x198] sm:$0xff] }
  0x1a   :  { %183 = vperm.xlu0 %565, %v28_v2   ;;  %42 = vperm.xlu1 %563, %v29_v3   ;;  %v287_v59 = vld [vmem:[#allocation2 + $0x1c8] sm:$0xff]  ;;  %v286_v63 = vld [vmem:[#allocation2 + $0x1c0] sm:$0xff]  ;;  %v285_v2 = vld [vmem:[#allocation2 + $0x1b8] sm:$0xff] }
  0x1b   :  { %564 = vset.pattern.permute.xlu2 %v646_v5  ;;  %301 = vmatpush.msra.mxu0 %v238_v27  ;;  %v246_v10 = vld [vmem:[#allocation2 + $0x80] sm:$0xff]  ;;  %v280_v13 = vld [vmem:[#allocation2 + $0x190] sm:$0xff]  ;;  %v279_v14 = vld [vmem:[#allocation2 + $0x188] sm:$0xff] }
  0x1c   :  { %90 = vperm.xlu2 %564, %v29_v3   ;;  %383 = vmatpush.msra.mxu2 %v270_v30  ;;  %v248_v3 = vld [vmem:[#allocation2 + $0x90] sm:$0xff]  ;;  %v282_v11 = vld [vmem:[#allocation2 + $0x1a0] sm:$0xff] }
  0x1d   :  { %302 = vmatpush.msra.mxu0 %v237_v31  ;;  %340 = vmatpush.msra.mxu1 %v256_v36  ;;  %v278_v16 = vld [vmem:[#allocation2 + $0x180] sm:$0xff] }
  0x1e   :  { %384 = vmatpush.msra.mxu2 %v269_v34  ;;  %419 = vmatpush.msra.mxu3 %v291_v42 }
  0x1f   :  { %303 = vmatpush.msra.mxu0 %v236_v35  ;;  %341 = vmatpush.msra.mxu1 %v255_v40 }
  0x20   :  { %385 = vmatpush.msra.mxu2 %v268_v37  ;;  %420 = vmatpush.msra.mxu3 %v290_v46 }
  0x21   :  { %304 = vmatpush.msra.mxu0 %v235_v39  ;;  %342 = vmatpush.msra.mxu1 %v254_v44 }
  0x22   :  { %192 = vperm.xlu0 %565, %v31_v7   ;;  %566 = vset.pattern.permute.xlu1 %v647_v6 }
  0x23   :  { %189 = vperm.xlu1 %566, %v30_v4   ;;  %386 = vmatpush.msra.mxu2 %v267_v41 }
  0x24   :  { %567 = vset.pattern.permute.xlu2 %v645_v1  ;;  %305 = vmatpush.msra.mxu0 %v234_v43 }
  0x25   :  { %45 = vperm.xlu2 %567, %v30_v4   ;;  %387 = vmatpush.msra.mxu2 %v266_v45 }
  0x26   :  { %306 = vmatpush.msra.mxu0 %v233_v47  ;;  %343 = vmatpush.msra.mxu1 %v253_v49 }
  0x27   :  { %388 = vmatpush.msra.mxu2 %v265_v50  ;;  %421 = vmatpush.msra.mxu3 %v289_v51 }
  0x28   :  { %307 = vmatpush.msra.mxu0 %v232_v52  ;;  %344 = vmatpush.msra.mxu1 %v252_v53 }
  0x29   :  { %389 = vmatpush.msra.mxu2 %v264_v54  ;;  %422 = vmatpush.msra.mxu3 %v288_v55 }
  0x2a   :  { %574 = vset.pattern.permute.xlu0 %v645_v1  ;;  %308 = vmatpush.msra.mxu0 %v231_v56 }
  0x2b   :  { %51 = vperm.xlu0 %574, %v32_v8   ;;  %568 = vset.pattern.permute.xlu1 %v646_v5 }
  0x2c   :  { %93 = vperm.xlu1 %568, %v30_v4   ;;  %345 = vmatpush.msra.mxu1 %v251_v57  ;;  %v284_v4 = vld [vmem:[#allocation2 + $0x1b0] sm:$0xff] }
  0x2d   :  { %569 = vset.pattern.permute.xlu2 %v644_v0  ;;  %390 = vmatpush.msra.mxu2 %v263_v58 }
  0x2e   :  { %144 = vperm.xlu2 %569, %v31_v7   ;;  %423 = vmatpush.msra.mxu3 %v287_v59 }
  0x2f   :  { %309 = vmatpush.msra.mxu0 %v230_v60  ;;  %346 = vmatpush.msra.mxu1 %v250_v61 }
  0x30   :  { %391 = vmatpush.msra.mxu2 %v262_v62  ;;  %424 = vmatpush.msra.mxu3 %v286_v63 }
  0x32   :  { %425 = vmatpush.msra.mxu3 %v285_v2 }
  0x33   :  { %579 = vset.pattern.permute.xlu0 %v646_v5 }
  0x34   :  { %102 = vperm.xlu0 %579, %v702_v9   ;;  %570 = vset.pattern.permute.xlu1 %v645_v1 }
  0x35   :  { %48 = vperm.xlu1 %570, %v31_v7   ;;  %426 = vmatpush.msra.mxu3 %v284_v4 }
  0x36   :  { %571 = vset.pattern.permute.xlu2 %v646_v5 }
  0x37   :  { %96 = vperm.xlu2 %571, %v31_v7  }
  0x3c   :  { %584 = vset.pattern.permute.xlu0 %v644_v0 }
  0x3d   :  { %572 = vset.pattern.permute.xlu1 %v644_v0  ;;  %156 = vperm.xlu0 %584, %v717_v28  }
  0x3e   :  { %147 = vperm.xlu1 %572, %v32_v8  }
  0x3f   :  { %573 = vset.pattern.permute.xlu2 %v647_v6 }
  0x40   :  { %195 = vperm.xlu2 %573, %v32_v8  }
  0x45   :  { %588 = vset.pattern.permute.xlu0 %v647_v6 }
  0x46   :  { %575 = vset.pattern.permute.xlu1 %v646_v5 }
  0x47   :  { %99 = vperm.xlu1 %575, %v32_v8   ;;  %v247_v8 = vld [vmem:[#allocation2 + $0x88] sm:$0xff] }
  0x48   :  { %576 = vset.pattern.permute.xlu2 %v644_v0 }
  0x49   :  { %150 = vperm.xlu2 %576, %v702_v9  }
  0x4f   :  { %577 = vset.pattern.permute.xlu1 %v647_v6 }
  0x50   :  { %198 = vperm.xlu1 %577, %v702_v9  }
  0x51   :  { %578 = vset.pattern.permute.xlu2 %v645_v1 }
  0x52   :  { %54 = vperm.xlu2 %578, %v702_v9   ;;  %v283_v9 = vld [vmem:[#allocation2 + $0x1a8] sm:$0xff] }
  0x53   :  { %427 = vmatpush.msra.mxu3 %v283_v9 }
  0x55   :  { %428 = vmatpush.msra.mxu3 %v282_v11 }
  0x57   :  { %429 = vmatpush.msra.mxu3 %v281_v12 }
  0x58   :  { %580 = vset.pattern.permute.xlu1 %v644_v0  ;;  %v249_v0 = vld [vmem:[#allocation2 + $0x98] sm:$0xff] }
  0x59   :  { %153 = vperm.xlu1 %580, %v34_v48   ;;  %347 = vmatpush.msra.mxu1 %v249_v0 }
  0x5a   :  { %581 = vset.pattern.permute.xlu2 %v647_v6  ;;  %430 = vmatpush.msra.mxu3 %v280_v13 }
  0x5b   :  { %201 = vperm.xlu2 %581, %v34_v48   ;;  %348 = vmatpush.msra.mxu1 %v248_v3 }
  0x5c   :  { %431 = vmatpush.msra.mxu3 %v279_v14 }
  0x5d   :  { %349 = vmatpush.msra.mxu1 %v247_v8 }
  0x5e   :  { %432 = vmatpush.msra.mxu3 %v278_v16 }
  0x5f   :  { %350 = vmatpush.msra.mxu1 %v246_v10 }
  0x61   :  { %582 = vset.pattern.permute.xlu1 %v645_v1 }
  0x62   :  { %57 = vperm.xlu1 %582, %v34_v48  }
  0x63   :  { %583 = vset.pattern.permute.xlu2 %v646_v5  ;;  %v139_v7 = vpop.permute.xlu2 %138 }
  0x64   :  { %105 = vperm.xlu2 %583, %v34_v48  }
  0x6a   :  { %585 = vset.pattern.permute.xlu1 %v647_v6  ;;  %v738_v6 = vand.u32 127, %v36_v17 }
  0x6b   :  { %204 = vperm.xlu1 %585, %v717_v28  }
  0x6c   :  { %586 = vset.pattern.permute.xlu2 %v645_v1  ;;  %v648_v1 = vmov 1.0   ;;  %vm159_vm2 = vcmp.eq.s32.totalorder %v738_v6, %v139_v7 }
  0x6d   :  { %60 = vperm.xlu2 %586, %v717_v28   ;;  %v187_v15 = vpop.permute.xlu2 %186 }
  0x6e   :  { %vm207_vm10 = vcmp.eq.s32.totalorder %v738_v6, %v187_v15 }
  0x73   :  { %587 = vset.pattern.permute.xlu1 %v646_v5 }
  0x74   :  { %108 = vperm.xlu1 %587, %v717_v28  }
  0x76   :  { %v91_v18 = vpop.permute.xlu2 %90 }
  0x77   :  { %vm111_vm5 = vcmp.eq.s32.totalorder %v738_v6, %v91_v18 }
  0x7a   :  { %v40_v19 = vpop.permute.xlu1 %39 }
  0x7b   :  { %v136_v20 = vpop.permute.xlu0 %135  ;;  %vm62_vm0 = vcmp.eq.s32.totalorder %v738_v6, %v40_v19 }
  0x7c   :  { %vm158_vm1 = vcmp.eq.s32.totalorder %v738_v6, %v136_v20  ;;  %517 = vmatmul.msk.f32.vlgmr.msra.gmra.mxu0 %vm62_vm0, %v648_v1 }
  0x7d   :  { %533 = vmatmul.msk.f32.vlgmr.msra.gmra.mxu2 %vm158_vm1, %v648_v1 }
  0x7f   :  { %v46_v5 = vpop.permute.xlu2 %45 }
  0x80   :  { %vm64_vm9 = vcmp.eq.s32.totalorder %v738_v6, %v46_v5 }
  0x83   :  { %v142_v21 = vpop.permute.xlu0 %141  ;;  %v88_v22 = vpop.permute.xlu1 %87 }
  0x84   :  { %vm110_vm3 = vcmp.eq.s32.totalorder %v738_v6, %v88_v22  ;;  %vm160_vm4 = vcmp.eq.s32.totalorder %v738_v6, %v142_v21 }
  0x85   :  { %534 = vmatmul.msk.f32.gmra.mxu2 %vm159_vm2, %v648_v1  ;;  %525 = vmatmul.msk.f32.vlgmr.msra.gmra.mxu1 %vm110_vm3, %v648_v1 }
  0x88   :  { %v145_v24 = vpop.permute.xlu2 %144 }
  0x89   :  { %vm161_vm8 = vcmp.eq.s32.totalorder %v738_v6, %v145_v24 }
  0x8c   :  { %v184_v23 = vpop.permute.xlu0 %183  ;;  %v43_v25 = vpop.permute.xlu1 %42 }
  0x8d   :  { %vm206_vm6 = vcmp.eq.s32.totalorder %v738_v6, %v184_v23  ;;  %535 = vmatmul.msk.f32.gmra.mxu2 %vm160_vm4, %v648_v1  ;;  %vm63_vm7 = vcmp.eq.s32.totalorder %v738_v6, %v43_v25  ;;  %526 = vmatmul.msk.f32.gmra.mxu1 %vm111_vm5, %v648_v1 }
  0x8e   :  { %541 = vmatmul.msk.f32.vlgmr.msra.gmra.mxu3 %vm206_vm6, %v648_v1  ;;  %518 = vmatmul.msk.f32.gmra.mxu0 %vm63_vm7, %v648_v1 }
  0x91   :  { %v97_v27 = vpop.permute.xlu2 %96 }
  0x92   :  { %vm113_vm14 = vcmp.eq.s32.totalorder %v738_v6, %v97_v27 }
  0x94   :  { %v193_v30 = vpop.permute.xlu0 %192 }
  0x95   :  { %536 = vmatmul.msk.f32.gmra.mxu2 %vm161_vm8, %v648_v1  ;;  %v190_v26 = vpop.permute.xlu1 %189  ;;  %vm209_vm13 = vcmp.eq.s32.totalorder %v738_v6, %v193_v30 }
  0x96   :  { %542 = vmatmul.msk.f32.gmra.mxu3 %vm207_vm10, %v648_v1  ;;  %519 = vmatmul.msk.f32.gmra.mxu0 %vm64_vm9, %v648_v1  ;;  %vm208_vm11 = vcmp.eq.s32.totalorder %v738_v6, %v190_v26 }
  0x9a   :  { %v196_v28 = vpop.permute.xlu2 %195 }
  0x9b   :  { %vm210_vm0 = vcmp.eq.s32.totalorder %v738_v6, %v196_v28 }
  0x9d   :  { %v52_v33 = vpop.permute.xlu0 %51 }
  0x9e   :  { %543 = vmatmul.msk.f32.gmra.mxu3 %vm208_vm11, %v648_v1  ;;  %v94_v29 = vpop.permute.xlu1 %93  ;;  %vm66_vm1 = vcmp.eq.s32.totalorder %v738_v6, %v52_v33 }
  0x9f   :  { %vm112_vm12 = vcmp.eq.s32.totalorder %v738_v6, %v94_v29 }
  0xa0   :  { %527 = vmatmul.msk.f32.gmra.mxu1 %vm112_vm12, %v648_v1 }
  0xa3   :  { %v151_v32 = vpop.permute.xlu2 %150 }
  0xa4   :  { %vm163_vm4 = vcmp.eq.s32.totalorder %v738_v6, %v151_v32 }
  0xa6   :  { %544 = vmatmul.msk.f32.gmra.mxu3 %vm209_vm13, %v648_v1  ;;  %v103_v38 = vpop.permute.xlu0 %102 }
  0xa7   :  { %v49_v31 = vpop.permute.xlu1 %48  ;;  %vm115_vm6 = vcmp.eq.s32.totalorder %v738_v6, %v103_v38 }
  0xa8   :  { %vm65_vm15 = vcmp.eq.s32.totalorder %v738_v6, %v49_v31  ;;  %528 = vmatmul.msk.f32.gmra.mxu1 %vm113_vm14, %v648_v1 }
  0xa9   :  { %520 = vmatmul.msk.f32.gmra.mxu0 %vm65_vm15, %v648_v1 }
  0xac   :  { %v55_v35 = vpop.permute.xlu2 %54 }
  0xad   :  { %vm67_vm3 = vcmp.eq.s32.totalorder %v738_v6, %v55_v35 }
  0xae   :  { %545 = vmatmul.msk.f32.gmra.mxu3 %vm210_vm0, %v648_v1 }
  0xaf   :  { %v157_v42 = vpop.permute.xlu0 %156 }
  0xb0   :  { %v148_v34 = vpop.permute.xlu1 %147  ;;  %vm165_vm11 = vcmp.eq.s32.totalorder %v738_v6, %v157_v42 }
  0xb1   :  { %vm162_vm2 = vcmp.eq.s32.totalorder %v738_v6, %v148_v34  ;;  %521 = vmatmul.msk.f32.gmra.mxu0 %vm66_vm1, %v648_v1 }
  0xb2   :  { %537 = vmatmul.msk.f32.gmra.mxu2 %vm162_vm2, %v648_v1 }
  0xb5   :  { %v202_v37 = vpop.permute.xlu2 %201 }
  0xb6   :  { %vm212_vm9 = vcmp.eq.s32.totalorder %v738_v6, %v202_v37 }
  0xb9   :  { %v100_v36 = vpop.permute.xlu1 %99  ;;  %522 = vmatmul.msk.f32.gmra.mxu0 %vm67_vm3, %v648_v1 }
  0xba   :  { %vm114_vm5 = vcmp.eq.s32.totalorder %v738_v6, %v100_v36  ;;  %538 = vmatmul.msk.f32.gmra.mxu2 %vm163_vm4, %v648_v1 }
  0xbb   :  { %529 = vmatmul.msk.f32.gmra.mxu1 %vm114_vm5, %v648_v1 }
  0xbe   :  { %v106_v40 = vpop.permute.xlu2 %105 }
  0xbf   :  { %vm116_vm8 = vcmp.eq.s32.totalorder %v738_v6, %v106_v40 }
  0xc2   :  { %v199_v39 = vpop.permute.xlu1 %198 }
  0xc3   :  { %vm211_vm7 = vcmp.eq.s32.totalorder %v738_v6, %v199_v39  ;;  %530 = vmatmul.msk.f32.gmra.mxu1 %vm115_vm6, %v648_v1 }
  0xc4   :  { %546 = vmatmul.msk.f32.gmra.mxu3 %vm211_vm7, %v648_v1 }
  0xc7   :  { %v61_v44 = vpop.permute.xlu2 %60 }
  0xc8   :  { %vm69_vm13 = vcmp.eq.s32.totalorder %v738_v6, %v61_v44 }
  0xcb   :  { %v154_v41 = vpop.permute.xlu1 %153  ;;  %531 = vmatmul.msk.f32.gmra.mxu1 %vm116_vm8, %v648_v1 }
  0xcc   :  { %vm164_vm10 = vcmp.eq.s32.totalorder %v738_v6, %v154_v41  ;;  %547 = vmatmul.msk.f32.gmra.mxu3 %vm212_vm9, %v648_v1 }
  0xcd   :  { %539 = vmatmul.msk.f32.gmra.mxu2 %vm164_vm10, %v648_v1 }
  0xd4   :  { %v58_v43 = vpop.permute.xlu1 %57 }
  0xd5   :  { %vm68_vm12 = vcmp.eq.s32.totalorder %v738_v6, %v58_v43  ;;  %540 = vmatmul.msk.f32.gmra.mxu2 %vm165_vm11, %v648_v1 }
  0xd6   :  { %523 = vmatmul.msk.f32.gmra.mxu0 %vm68_vm12, %v648_v1 }
  0xdd   :  { %v205_v45 = vpop.permute.xlu1 %204 }
  0xde   :  { %vm213_vm14 = vcmp.eq.s32.totalorder %v738_v6, %v205_v45  ;;  %524 = vmatmul.msk.f32.gmra.mxu0 %vm69_vm13, %v648_v1 }
  0xdf   :  { %548 = vmatmul.msk.f32.gmra.mxu3 %vm213_vm14, %v648_v1 }
  0xe6   :  { %v109_v46 = vpop.permute.xlu1 %108 }
  0xe7   :  { %vm117_vm15 = vcmp.eq.s32.totalorder %v738_v6, %v109_v46 }
  0xe8   :  { %532 = vmatmul.msk.f32.gmra.mxu1 %vm117_vm15, %v648_v1 }
  0xf9   :  { %v311_v48 = vpop.f32.mrf.mxu0 }
 0x100   :  { %v393_v49 = vpop.f32.mrf.mxu2 }
 0x102   :  { %v352_v47 = vpop.f32.mrf.mxu1 }
 0x103   :  { %v353_v50 = vadd.f32 %v352_v47, %v311_v48 }
 0x105   :  { %v394_v52 = vadd.f32 %v393_v49, %v353_v50 }
 0x108   :  { %v396_v57 = vpop.f32.mrf.mxu2 }
 0x10a   :  { %v355_v51 = vpop.f32.mrf.mxu1 }
 0x10b   :  { %v314_v53 = vpop.f32.mrf.mxu0 }
 0x10c   :  { %v356_v56 = vadd.f32 %v355_v51, %v314_v53 }
 0x10e   :  { %v397_v58 = vadd.f32 %v396_v57, %v356_v56 }
 0x110   :  { %v399_v62 = vpop.f32.mrf.mxu2 }
 0x111   :  { %v434_v54 = vpop.f32.mrf.mxu3 }
 0x112   :  { %v435_v55 = vadd.f32 %v434_v54, %v394_v52 }
 0x113   :  { %v317_v61 = vpop.f32.mrf.mxu0 }
 0x114   :  { %458 = vst [vmem:[#allocation5] sm:$0xff] %v435_v55 }
 0x118   :  { %v402_v9 = vpop.f32.mrf.mxu2 }
 0x119   :  { %v437_v59 = vpop.f32.mrf.mxu3 }
 0x11a   :  { %v438_v60 = vadd.f32 %v437_v59, %v397_v58 }
 0x11c   :  { %459 = vst [vmem:[#allocation5 + $0x8] sm:$0xff] %v438_v60 }
 0x11d   :  { %v358_v63 = vpop.f32.mrf.mxu1 }
 0x11e   :  { %v359_v0 = vadd.f32 %v358_v63, %v317_v61 }
 0x120   :  { %v400_v2 = vadd.f32 %v399_v62, %v359_v0 }
 0x121   :  { %v440_v3 = vpop.f32.mrf.mxu3 }
 0x122   :  { %v441_v4 = vadd.f32 %v440_v3, %v400_v2 }
 0x124   :  { %460 = vst [vmem:[#allocation5 + $0x10] sm:$0xff] %v441_v4 }
 0x125   :  { %v361_v7 = vpop.f32.mrf.mxu1 }
 0x126   :  { %v320_v8 = vpop.f32.mrf.mxu0 }
 0x127   :  { %v362_v10 = vadd.f32 %v361_v7, %v320_v8 }
 0x129   :  { %v443_v11 = vpop.f32.mrf.mxu3  ;;  %v403_v12 = vadd.f32 %v402_v9, %v362_v10 }
 0x12b   :  { %v444_v13 = vadd.f32 %v443_v11, %v403_v12 }
 0x12d   :  { %461 = vst [vmem:[#allocation5 + $0x18] sm:$0xff] %v444_v13 }
 0x12e   :  { %v323_v14 = vpop.f32.mrf.mxu0 }
 0x131   :  { %v446_v6 = vpop.f32.mrf.mxu3 }
 0x135   :  { %v405_v16 = vpop.f32.mrf.mxu2 }
 0x136   :  { %v326_v20 = vpop.f32.mrf.mxu0 }
 0x138   :  { %v364_v15 = vpop.f32.mrf.mxu1 }
 0x139   :  { %v365_v17 = vadd.f32 %v364_v15, %v323_v14 }
 0x13b   :  { %v406_v18 = vadd.f32 %v405_v16, %v365_v17 }
 0x13d   :  { %v447_v19 = vadd.f32 %v446_v6, %v406_v18  ;;  %v408_v21 = vpop.f32.mrf.mxu2 }
 0x13f   :  { %462 = vst [vmem:[#allocation5 + $0x20] sm:$0xff] %v447_v19 }
 0x140   :  { %v367_v1 = vpop.f32.mrf.mxu1 }
 0x141   :  { %v368_v5 = vadd.f32 %v367_v1, %v326_v20 }
 0x143   :  { %v409_v22 = vadd.f32 %v408_v21, %v368_v5 }
 0x147   :  { %v449_v23 = vpop.f32.mrf.mxu3 }
 0x148   :  { %v450_v24 = vadd.f32 %v449_v23, %v409_v22  ;;  %v370_v25 = vpop.f32.mrf.mxu1 }
 0x14a   :  { %463 = vst [vmem:[#allocation5 + $0x28] sm:$0xff] %v450_v24 }
 0x14f   :  { %v452_v29 = vpop.f32.mrf.mxu3 }
 0x150   :  { %v411_v28 = vpop.f32.mrf.mxu2 }
 0x153   :  { %v329_v26 = vpop.f32.mrf.mxu0 }
 0x154   :  { %v371_v27 = vadd.f32 %v370_v25, %v329_v26 }
 0x156   :  { %v412_v30 = vadd.f32 %v411_v28, %v371_v27 }
 0x158   :  { %v453_v31 = vadd.f32 %v452_v29, %v412_v30  ;;  %v414_v34 = vpop.f32.mrf.mxu2 }
 0x15a   :  { %464 = vst [vmem:[#allocation5 + $0x30] sm:$0xff] %v453_v31 }
 0x15b   :  { %v332_v32 = vpop.f32.mrf.mxu0 }
 0x162   :  { %v455_v37 = vpop.f32.mrf.mxu3 }
 0x165   :  { %v373_v33 = vpop.f32.mrf.mxu1 }
 0x166   :  { %v374_v35 = vadd.f32 %v373_v33, %v332_v32 }
 0x168   :  { %v415_v36 = vadd.f32 %v414_v34, %v374_v35 }
 0x16a   :  { %v456_v38 = vadd.f32 %v455_v37, %v415_v36 }
 0x16c   :  { %465 = vst [vmem:[#allocation5 + $0x38] sm:$0xff] %v456_v38 }
 0x16d   :  { %478 = dma.vmem_to_hbm [thread:$0]  %s471_s3, 1024, %s473_s6, [#allocation4], %s642_s14, %s642_s14, %s643_s15  }
 0x16e   :  { %639 = dma.done.wait [#allocation4], 1024  }
 0x16f   :  { %640 = vsyncadd [#allocation4], 4294966272 }
 0x170   :  { %483 = vsyncpa [#allocation3], 1 }
 0x171   :  { %484 = vsyncpa [#allocation4], 1 }

</bundles_post_ra>
